<compile_context>
chip_gen: v5e
topology: v5e:2x2
jax: 0.10.0
libtpu: 0.0.40
codegen_flags: <defaults>
</compile_context>

<pallas_src>
import functools
import math

import jax
import jax.numpy as jnp
from jax.experimental import pallas as pl
from jax.experimental.pallas import tpu as pltpu


# ------------------------------------------------------------------ helpers --
def _round_up(x, m):
    return ((x + m - 1) // m) * m


def _pad2(a, r, c):
    pr, pc = r - a.shape[0], c - a.shape[1]
    if pr == 0 and pc == 0:
        return a
    return jnp.pad(a, ((0, pr), (0, pc)))


_VMEM_LIMIT = 32 * 1024 * 1024      # safe on every generation (v5e .. v7x)
_AGG_MAX_TILE = 512                 # bf16 A tile + resident XW well under limit
_ADJ_MAX_TILE = 1024                # 2x(t,t) bf16 in + (t,t) f32 out, ~16 MiB double-buffered
_XW_RESIDENT_BYTES = 8 * 1024 * 1024
# bf16 is exact for edge / path-count weights < 256 (true for this model's
# chain meshes); set to jnp.float32 if adjacency weights can grow larger.
_A_DTYPE = jnp.bfloat16


def _choose_tiles(n, max_tile):
    """Pick a (multiple-of-128) tile and pad n up to a multiple of it.

    Candidates are scored by n_pad**3 / t (operand-traffic proxy of a K-tiled
    matmul), so we never silently fall back to t=128 for awkward N and only
    accept zero padding when the bigger tile pays for it.  Tiles that would
    leave a single step on the leading 'parallel' grid axis are skipped when n
    allows >=2 (keeps both v7x TensorCores busy).
    """
    n128 = _round_up(n, 128)
    best = None
    for t in range(128, max_tile + 1, 128):
        n_pad = _round_up(n128, t)
        if n128 > 128 and n_pad // t < 2:
            continue
        cost = (n_pad ** 3) / t
        if best is None or cost < best[0] or (cost == best[0] and t > best[1]):
            best = (cost, t, n_pad)
    _, t, n_pad = best
    return n_pad, t


# ------------------------------------------------------------------ kernels --
def _xw_kernel(x_ref, w_ref, dinv_ref, b_ref, xws_ref, extra_ref, *, self_w):
    # XW = X @ W once per layer.  The gcn_norm row scaling and the
    # (self-loop + bias) correction are produced here (O(N*F)) so the big A
    # contraction below is a bare matmul with no per-K-step fix-ups.
    xw = jnp.dot(x_ref[...], w_ref[...], preferred_element_type=jnp.float32)
    d = dinv_ref[...]
    xws_ref[...] = d * xw                                   # diag(d) @ XW
    extra_ref[...] = (self_w * d * d) * xw + b_ref[...]     # self-loop + bias


def _gcn_agg_kernel(a_ref, xws_ref, dinv_ref, extra_ref, o_ref, *,
                    apply_act, tk, xw_resident):
    # out = diag(d) @ (A @ (diag(d)@XW)) + self_w*d^2*XW + b   (+ ReLU)
    # Hot loop: bf16 A tile (halved HBM traffic) -> plain matmul into the
    # VMEM-resident f32 output block.  Normalization / bias / activation only
    # run in the k == last epilogue.
    k = pl.program_id(1)

    @pl.when(k == 0)
    def _():
        o_ref[...] = jnp.zeros_like(o_ref)

    if xw_resident:
        off = pl.multiple_of(k * tk, tk)
        xws = xws_ref[pl.ds(off, tk), :]
    else:
        xws = xws_ref[...]
    o_ref[...] += jnp.dot(a_ref[...].astype(jnp.float32), xws,
                          preferred_element_type=jnp.float32)

    @pl.when(k == pl.num_programs(1) - 1)
    def _():
        out = dinv_ref[...] * o_ref[...] + extra_ref[...]
        if apply_act:
            out = jnp.maximum(out, 0.0)
        o_ref[...] = out


def _adj_square_kernel(al_ref, ar_ref, o_ref):
    # GraphUNet.augment_adj fused: (A with unit diag)^2, diag of result removed.
    # The unit diagonal is baked into the bf16 operands by the wrapper, so the
    # hot loop is a bare bf16 MXU matmul with f32 accumulation directly into
    # the VMEM-resident output block.  Diagonal removal only touches
    # same-index (i == j) blocks.
    i = pl.program_id(0)
    j = pl.program_id(1)
    k = pl.program_id(2)

    @pl.when(k == 0)
    def _():
        o_ref[...] = jnp.zeros_like(o_ref)

    o_ref[...] += jnp.dot(al_ref[...], ar_ref[...],
                          preferred_element_type=jnp.float32)

    @pl.when((k == pl.num_programs(2) - 1) & (i == j))
    def _():
        t0, t1 = o_ref.shape
        r = jax.lax.broadcasted_iota(jnp.int32, (t0, t1), 0)
        c = jax.lax.broadcasted_iota(jnp.int32, (t0, t1), 1)
        o_ref[...] = jnp.where(r == c, 0.0, o_ref[...])


# ----------------------------------------------------------------- wrappers --
def gcn_conv(a, x, w, b, apply_act):
    """GCNConv (improved=True): D^-1/2 (A + 2I) D^-1/2 @ (X @ W) + b, opt. ReLU.

    a: (n, n) raw dense adjacency (no self loops), x: (n, f_in),
    w: (f_in, f_out), b: (f_out,)
    """
    n, f_in = x.shape
    f_out = w.shape[1]
    n_pad, tm = _choose_tiles(n, _AGG_MAX_TILE)
    tk = tm
    fi_pad = _round_up(f_in, 128)
    fo_pad = _round_up(f_out, 128)

    # Normalization vector (gcn_norm, improved=True); padded nodes get dinv = 0
    # so they contribute nothing.  Adjacency assumed symmetric (bidir. mesh).
    # TODO(synk): deg could be emitted as a fused partial-sum output of the
    # adjacency kernels instead of this XLA O(N^2) read.
    deg = a.sum(axis=0) + 2.0
    dinv = jnp.pad(jax.lax.rsqrt(deg), (0, n_pad - n)).reshape(n_pad, 1)

    # A streamed in bf16 (single fused pad + cast XLA pass).
    a_p = _pad2(a, n_pad, n_pad).astype(_A_DTYPE)
    x_p = _pad2(x, n_pad, fi_pad)
    w_p = _pad2(w, fi_pad, fo_pad)
    b_p = jnp.pad(b, (0, fo_pad - f_out)).reshape(1, fo_pad)

    # 1) XW once, plus row-scaled XW_s and the (self-loop + bias) correction.
    xw_s, extra = pl.pallas_call(
        functools.partial(_xw_kernel, self_w=2.0),
        grid=(n_pad // tm,),
        in_specs=[pl.BlockSpec((tm, fi_pad), lambda i: (i, 0)),
                  pl.BlockSpec((fi_pad, fo_pad), lambda i: (0, 0)),
                  pl.BlockSpec((tm, 1), lambda i: (i, 0)),
                  pl.BlockSpec((1, fo_pad), lambda i: (0, 0))],
        out_specs=[pl.BlockSpec((tm, fo_pad), lambda i: (i, 0)),
                   pl.BlockSpec((tm, fo_pad), lambda i: (i, 0))],
        out_shape=[jax.ShapeDtypeStruct((n_pad, fo_pad), jnp.float32),
                   jax.ShapeDtypeStruct((n_pad, fo_pad), jnp.float32)],
        compiler_params=pltpu.CompilerParams(
            dimension_semantics=("parallel",),
            vmem_limit_bytes=_VMEM_LIMIT),
    )(x_p, w_p, dinv, b_p)

    # 2) tiled A @ XW_s; dinv scaling, self-loop term, bias and ReLU only in
    #    the k==last epilogue.  XW_s is VMEM-resident whenever it fits.
    xw_resident = n_pad * fo_pad * 4 <= _XW_RESIDENT_BYTES
    if xw_resident:
        xws_spec = pl.BlockSpec((n_pad, fo_pad), lambda i, k: (0, 0))
    else:
        xws_spec = pl.BlockSpec((tk, fo_pad), lambda i, k: (k, 0))

    out = pl.pallas_call(
        functools.partial(_gcn_agg_kernel, apply_act=apply_act, tk=tk,
                          xw_resident=xw_resident),
        grid=(n_pad // tm, n_pad // tk),
        in_specs=[
            pl.BlockSpec((tm, tk), lambda i, k: (i, k)),        # bf16 A tile
            xws_spec,                                           # diag(d) @ XW
            pl.BlockSpec((tm, 1), lambda i, k: (i, 0)),         # d (rows)
            pl.BlockSpec((tm, fo_pad), lambda i, k: (i, 0)),    # self-loop+bias
        ],
        out_specs=pl.BlockSpec((tm, fo_pad), lambda i, k: (i, 0)),
        out_shape=jax.ShapeDtypeStruct((n_pad, fo_pad), jnp.float32),
        compiler_params=pltpu.CompilerParams(
            dimension_semantics=("parallel", "arbitrary"),
            vmem_limit_bytes=_VMEM_LIMIT),
    )(a_p, xw_s, dinv, extra)

    return out[:n, :f_out]


def augment_adj(a):
    """GraphUNet.augment_adj on a dense adjacency: (A with unit diag)^2, diag removed."""
    n = a.shape[0]
    n_pad, t = _choose_tiles(n, _ADJ_MAX_TILE)

    # Unit self-loops fused into the single pad + bf16-cast XLA pass (one HBM
    # read of A, one bf16 write) -> zero per-K-step operand fix-ups in-kernel.
    rows = jax.lax.broadcasted_iota(jnp.int32, (n_pad, n_pad), 0)
    cols = jax.lax.broadcasted_iota(jnp.int32, (n_pad, n_pad), 1)
    a1 = jnp.where(rows == cols, 1.0, _pad2(a, n_pad, n_pad)).astype(_A_DTYPE)

    # TODO(synk): pipeline_mode=pl.Buffered(3) on the two A streams would help
    # hide DMA jitter on v6e where this kernel is HBM-bound.
    out = pl.pallas_call(
        _adj_square_kernel,
        grid=(n_pad // t, n_pad // t, n_pad // t),
        in_specs=[pl.BlockSpec((t, t), lambda i, j, k: (i, k)),
                  pl.BlockSpec((t, t), lambda i, j, k: (k, j))],
        out_specs=pl.BlockSpec((t, t), lambda i, j, k: (i, j)),
        out_shape=jax.ShapeDtypeStruct((n_pad, n_pad), jnp.float32),
        compiler_params=pltpu.CompilerParams(
            dimension_semantics=("parallel", "parallel", "arbitrary"),
            vmem_limit_bytes=_VMEM_LIMIT),
    )(a1, a1)
    return out[:n, :n]


# --------------------------------------------------------------------- glue --
def to_dense_adj(edge_index, n):
    a = jnp.zeros((n, n), jnp.float32)
    return a.at[edge_index[0], edge_index[1]].add(1.0)


def topk_pool(x, a, p, ratio):
    # TopKPooling(ratio=0.5, nonlinearity=tanh, multiplier=1), single batch.
    # TODO(synk): argsort / gather / scatter have no clean Pallas equivalent;
    # kept as XLA glue.
    n = x.shape[0]
    k = int(math.ceil(ratio * n))
    norm = jnp.maximum(jnp.linalg.norm(p), 1e-12)
    score = jnp.tanh((x @ p) / norm)
    perm = jnp.argsort(-score)[:k]
    x_new = x[perm] * score[perm][:, None]
    a_new = a[perm][:, perm]  # filter_adj (edge weights preserved, relabelled)
    return x_new, a_new, perm


# ----------------------------------------------------------- model forward --
def graph_unet_forward(params, x, a, *, depth, ratio=0.5):
    x = gcn_conv(a, x, params["down"][0]["w"], params["down"][0]["b"], True)

    xs, adjs, perms = [x], [a], []
    for i in range(1, depth + 1):
        a = augment_adj(a)
        x, a, perm = topk_pool(x, a, params["pool"][i - 1], ratio)
        x = gcn_conv(a, x, params["down"][i]["w"], params["down"][i]["b"], True)
        if i < depth:
            xs.append(x)
            adjs.append(a)
        perms.append(perm)

    for i in range(depth):
        j = depth - 1 - i
        res, a, perm = xs[j], adjs[j], perms[j]
        up = jnp.zeros_like(res).at[perm].set(x)
        x = res + up  # sum_res=True
        apply_act = i < depth - 1
        x = gcn_conv(a, x, params["up"][i]["w"], params["up"][i]["b"], apply_act)
    return x


def graphnet_forward(params, edge_index, meshfield, *, n_timesteps, n_fields, depth):
    n = meshfield.shape[0]
    a = to_dense_adj(edge_index, n)
    x = graph_unet_forward(params, meshfield, a, depth=depth)
    return x.reshape(-1, n_timesteps, n_fields)


# -------------------------------------------------------------- parameters --
def _glorot(key, shape):
    fan_in, fan_out = shape
    lim = math.sqrt(6.0 / (fan_in + fan_out))
    return jax.random.uniform(key, shape, jnp.float32, -lim, lim)


def init_params(key, in_ch, hidden, out_ch, depth):
    n_keys = (depth + 1) + depth + depth
    keys = iter(jax.random.split(key, n_keys))
    params = {"down": [], "pool": [], "up": []}
    for (fi, fo) in [(in_ch, hidden)] + [(hidden, hidden)] * depth:
        params["down"].append({"w": _glorot(next(keys), (fi, fo)),
                               "b": jnp.zeros((fo,), jnp.float32)})
    for _ in range(depth):
        params["pool"].append(_glorot(next(keys), (hidden, 1))[:, 0])
    for (fi, fo) in [(hidden, hidden)] * (depth - 1) + [(hidden, out_ch)]:
        params["up"].append({"w": _glorot(next(keys), (fi, fo)),
                             "b": jnp.zeros((fo,), jnp.float32)})
    return params


# --------------------------------------------------------------------- main --
if __name__ == "__main__":
    N_NODES = 16          # nodes of the 1-D mesh
    N_MESHFIELDS = 4      # n_meshfields[0] -> GraphUNet in_channels
    HIDDEN = 32           # hidden_size
    N_FIELDS = 2          # n_fields
    N_TIMESTEPS = 3       # n_timesteps
    N_LAYERS = 4          # -> GraphUNet depth = n_layers / 2 = 2
    DEPTH = N_LAYERS // 2

    key = jax.random.PRNGKey(0)
    k_x, k_p = jax.random.split(key)

    meshfield = jax.random.normal(k_x, (N_NODES, N_MESHFIELDS), jnp.float32)

    # 1-D chain mesh with bidirectional edges (Codes_1Dtree style).
    src = jnp.arange(N_NODES - 1, dtype=jnp.int32)
    dst = src + 1
    edge_index = jnp.stack(
        [jnp.concatenate([src, dst]), jnp.concatenate([dst, src])], axis=0
    )

    params = init_params(k_p, N_MESHFIELDS, HIDDEN, N_FIELDS * N_TIMESTEPS, DEPTH)

    out = graphnet_forward(
        params, edge_index, meshfield,
        n_timesteps=N_TIMESTEPS, n_fields=N_FIELDS, depth=DEPTH,
    )
    jax.block_until_ready(out)
    assert out.shape == (N_NODES, N_TIMESTEPS, N_FIELDS), out.shape
    assert out.dtype == jnp.float32
    print("KERNEL_OK")
</pallas_src>

<mosaic_0001>
module attributes {stable_mosaic.version = 11 : i64} {
  func.func @_xw_kernel(%arg0: i32, %arg1: memref<128x128xf32, #tpu.memory_space<vmem>>, %arg2: memref<128x128xf32, #tpu.memory_space<vmem>>, %arg3: memref<128x1xf32, #tpu.memory_space<vmem>>, %arg4: memref<1x128xf32, #tpu.memory_space<vmem>>, %arg5: memref<128x128xf32, #tpu.memory_space<vmem>>, %arg6: memref<128x128xf32, #tpu.memory_space<vmem>>) attributes {dimension_semantics = [#tpu.dimension_semantics<parallel>], iteration_bounds = array<i64: 1>, scalar_prefetch = 0 : i64, scratch_operands = 0 : i64, tpu.core_type = #tpu.core_type<tc>, window_params = [{transform_indices = @transform_0, window_bounds = array<i64: 128, 128>}, {pipeline_mode = #tpu.pipeline_mode<synchronous>, transform_indices = @transform_1, window_bounds = array<i64: 128, 128>}, {transform_indices = @transform_2, window_bounds = array<i64: 128, 1>}, {pipeline_mode = #tpu.pipeline_mode<synchronous>, transform_indices = @transform_3, window_bounds = array<i64: 1, 128>}, {transform_indices = @transform_4, window_bounds = array<i64: 128, 128>}, {transform_indices = @transform_5, window_bounds = array<i64: 128, 128>}]} {
    %c0 = arith.constant 0 : index
    %c0_0 = arith.constant 0 : index
    %0 = vector.load %arg1[%c0, %c0_0] : memref<128x128xf32, #tpu.memory_space<vmem>>, vector<128x128xf32>
    %c0_1 = arith.constant 0 : index
    %c0_2 = arith.constant 0 : index
    %1 = vector.load %arg2[%c0_1, %c0_2] : memref<128x128xf32, #tpu.memory_space<vmem>>, vector<128x128xf32>
    %cst = arith.constant dense<0.000000e+00> : vector<128x128xf32>
    %2 = tpu.matmul %0, %1, %cst {dimension_numbers = #tpu.dot_dimension_numbers<[1], [0], [0], [1], [0, 0, 1, 1], [], []>} : vector<128x128xf32>, vector<128x128xf32>, vector<128x128xf32> -> vector<128x128xf32>
    %c0_3 = arith.constant 0 : index
    %c0_4 = arith.constant 0 : index
    %3 = vector.load %arg3[%c0_3, %c0_4] : memref<128x1xf32, #tpu.memory_space<vmem>>, vector<128x1xf32>
    %4 = vector.broadcast %3 : vector<128x1xf32> to vector<128x128xf32>
    %5 = arith.mulf %4, %2 : vector<128x128xf32>
    %c0_5 = arith.constant 0 : index
    %c0_6 = arith.constant 0 : index
    %6 = vector.load %arg5[%c0_5, %c0_6] : memref<128x128xf32, #tpu.memory_space<vmem>>, vector<128x128xf32>
    tpu.vector_store %arg5[%c0_5, %c0_6], %5 {strides = array<i32>} : memref<128x128xf32, #tpu.memory_space<vmem>>, vector<128x128xf32>,
    %cst_7 = arith.constant 2.000000e+00 : f32
    %7 = vector.broadcast %cst_7 : f32 to vector<128x1xf32>
    %8 = arith.mulf %7, %3 : vector<128x1xf32>
    %9 = arith.mulf %8, %3 : vector<128x1xf32>
    %10 = vector.broadcast %9 : vector<128x1xf32> to vector<128x128xf32>
    %11 = arith.mulf %10, %2 : vector<128x128xf32>
    %c0_8 = arith.constant 0 : index
    %c0_9 = arith.constant 0 : index
    %12 = vector.load %arg4[%c0_8, %c0_9] : memref<1x128xf32, #tpu.memory_space<vmem>>, vector<1x128xf32>
    %13 = vector.broadcast %12 : vector<1x128xf32> to vector<128x128xf32>
    %14 = arith.addf %11, %13 : vector<128x128xf32>
    %c0_10 = arith.constant 0 : index
    %c0_11 = arith.constant 0 : index
    %15 = vector.load %arg6[%c0_10, %c0_11] : memref<128x128xf32, #tpu.memory_space<vmem>>, vector<128x128xf32>
    tpu.vector_store %arg6[%c0_10, %c0_11], %14 {strides = array<i32>} : memref<128x128xf32, #tpu.memory_space<vmem>>, vector<128x128xf32>,
    return
  }
  func.func @transform_0(%arg0: i32) -> (i32, i32) {
    %c0_i32 = arith.constant 0 : i32
    %c0_i32_0 = arith.constant 0 : i32
    return %arg0, %c0_i32 : i32, i32
  }
  func.func @transform_1(%arg0: i32) -> (i32, i32) {
    %c0_i32 = arith.constant 0 : i32
    %c0_i32_0 = arith.constant 0 : i32
    %c0_i32_1 = arith.constant 0 : i32
    return %c0_i32, %c0_i32_0 : i32, i32
  }
  func.func @transform_2(%arg0: i32) -> (i32, i32) {
    %c0_i32 = arith.constant 0 : i32
    %c0_i32_0 = arith.constant 0 : i32
    return %arg0, %c0_i32 : i32, i32
  }
  func.func @transform_3(%arg0: i32) -> (i32, i32) {
    %c0_i32 = arith.constant 0 : i32
    %c0_i32_0 = arith.constant 0 : i32
    %c0_i32_1 = arith.constant 0 : i32
    return %c0_i32, %c0_i32_0 : i32, i32
  }
  func.func @transform_4(%arg0: i32) -> (i32, i32) {
    %c0_i32 = arith.constant 0 : i32
    %c0_i32_0 = arith.constant 0 : i32
    return %arg0, %c0_i32 : i32, i32
  }
  func.func @transform_5(%arg0: i32) -> (i32, i32) {
    %c0_i32 = arith.constant 0 : i32
    %c0_i32_0 = arith.constant 0 : i32
    return %arg0, %c0_i32 : i32, i32
  }
}

</mosaic_0001>

<bundles_post_ra>
// kernel: tpu_custom_call.1
= control target key start
LH: loop header
LB: loop body
LE: loop exit
PB: predicated region body
PF: predicated region fallthrough
CT: control target
= control target key end

     0   :  { %11 = vsyncpa [#allocation3], 0  ;;  %s870_s0 = inlined_call_operand.vmem [shape: f32[128,128], index: 0, kind: input, shape index: {}]   ;;  %s871_s1 = inlined_call_operand.hbm [shape: f32[128,128], index: 1, kind: input, shape index: {}]   ;;  %s872_s2 = inlined_call_operand.vmem [shape: f32[128,1], index: 2, kind: input, shape index: {}]   ;;  %s873_s3 = inlined_call_operand.vmem [shape: f32[1,128], index: 3, kind: input, shape index: {}]   ;;  %s874_s4 = inlined_call_operand.hbm [shape: f32[128,128], index: 4, kind: output, shape index: {0}]   ;;  %s875_s5 = inlined_call_operand.hbm [shape: f32[128,128], index: 5, kind: output, shape index: {1}]  }
   0x1   :  { %12 = vsyncpa [#allocation4], 0 }
   0x2   :  { %13 = vsyncpa [#allocation7], 0  ;;  %s20_s20 = sshll.u32 %s871_s1, 4  ;;  %s599_s21 = smov [#allocation2]   ;;  %s21_s20 = int_to_ptr.hbm [resolvable:$true] %s20_s20 }
   0x3   :  { %s22_s22 = sshll.u32 %s599_s21, 4  ;;  %s600_s23 = smov 128   ;;  %s23_s22 = int_to_ptr.vmem [resolvable:$true] %s22_s22 }
   0x4   :  { %s601_s24 = smov 8  }
   0x5   :  { %28 = dma.hbm_to_vmem [thread:$0]  %s21_s20, 2048, %s23_s22, [#allocation3], %s600_s23, %s600_s23, %s601_s24  }
   0x6   :  { %593 = dma.done.wait [#allocation3], 2048  }
   0x7   :  { %594 = vsyncadd [#allocation3], 4294965248  ;;  %v602_v0 = vmov 0   ;;  %v644_v1 = vld [vmem:[%s872_s2 + $0x20] sm:$0xff]  ;;  %v649_v2 = vld [vmem:[%s872_s2 + $0x10] sm:$0xff]  ;;  %s432_s18 = sshll.u32 %s874_s4, 4  ;;  %s433_s18 = int_to_ptr.hbm [resolvable:$true] %s432_s18 }
   0x8   :  { %519 = vset.pattern.permute.xlu2 %v602_v0  ;;  %518 = vset.pattern.permute.xlu1 %v602_v0  ;;  %v654_v3 = vld [vmem:[%s872_s2] sm:$0xff]  ;;  %v68_v4 = vld [vmem:[#allocation2 + $0x78] sm:$0xff]  ;;  %v67_v5 = vld [vmem:[#allocation2 + $0x70] sm:$0xff]  ;;  %v266_v45 = vmul.f32 2.0, %v644_v1  ;;  %v264_v47 = vmul.f32 2.0, %v649_v2  ;;  %s604_s19 = smov [#allocation6]  }
   0x9   :  { %517 = vset.pattern.permute.xlu0 %v602_v0  ;;  %172 = vperm.xlu2 %519, %v644_v1   ;;  %v66_v6 = vld [vmem:[#allocation2 + $0x68] sm:$0xff]  ;;  %v65_v7 = vld [vmem:[#allocation2 + $0x60] sm:$0xff]  ;;  %v667_v9 = vld [vmem:[%s872_s2 + $0x18] sm:$0xff]  ;;  %v262_v36 = vmul.f32 2.0, %v654_v3  ;;  %s443_s20 = sshll.u32 %s604_s19, 4  ;;  %s445_s25 = sshll.u32 %s875_s5, 4  ;;  %s444_s20 = int_to_ptr.vmem [resolvable:$true] %s443_s20  ;;  %s446_s25 = int_to_ptr.hbm [resolvable:$true] %s445_s25 }
   0xa   :  { %162 = vperm.xlu1 %518, %v649_v2   ;;  %152 = vperm.xlu0 %517, %v654_v3   ;;  %v662_v8 = vld [vmem:[%s872_s2 + $0x28] sm:$0xff]  ;;  %v64_v11 = vld [vmem:[#allocation2 + $0x58] sm:$0xff]  ;;  %v63_v12 = vld [vmem:[#allocation2 + $0x50] sm:$0xff]  ;;  %v265_v46 = vmul.f32 2.0, %v667_v9  ;;  %v282_v52 = vmul.f32 %v266_v45, %v644_v1  ;;  %v280_v54 = vmul.f32 %v264_v47, %v649_v2 }
   0xb   :  { %69 = vmatpush.msra.mxu0 %v68_v4  ;;  %463 = vmatpush.msra.mxu1 %v68_v4  ;;  %v672_v10 = vld [vmem:[%s872_s2 + $0x8] sm:$0xff]  ;;  %v61_v14 = vld [vmem:[#allocation2 + $0x40] sm:$0xff]  ;;  %v685_v16 = vld [vmem:[%s872_s2 + $0x38] sm:$0xff]  ;;  %v278_v43 = vmul.f32 %v262_v36, %v654_v3  ;;  %v267_v57 = vmul.f32 2.0, %v662_v8 }
   0xc   :  { %464 = vmatpush.msra.mxu2 %v68_v4  ;;  %465 = vmatpush.msra.mxu3 %v68_v4  ;;  %v62_v13 = vld [vmem:[#allocation2 + $0x48] sm:$0xff]  ;;  %v680_v15 = vld [vmem:[%s872_s2 + $0x40] sm:$0xff]  ;;  %v690_v17 = vld [vmem:[%s872_s2 + $0x30] sm:$0xff]  ;;  %v263_v37 = vmul.f32 2.0, %v672_v10  ;;  %v281_v53 = vmul.f32 %v265_v46, %v667_v9  ;;  %v269_v55 = vmul.f32 2.0, %v685_v16 }
   0xd   :  { %70 = vmatpush.msra.mxu0 %v67_v5  ;;  %466 = vmatpush.msra.mxu1 %v67_v5  ;;  %v60_v18 = vld [vmem:[#allocation2 + $0x38] sm:$0xff]  ;;  %v59_v19 = vld [vmem:[#allocation2 + $0x30] sm:$0xff]  ;;  %v58_v20 = vld [vmem:[#allocation2 + $0x28] sm:$0xff]  ;;  %v268_v56 = vmul.f32 2.0, %v690_v17  ;;  %v283_v0 = vmul.f32 %v267_v57, %v662_v8  ;;  %v270_v3 = vmul.f32 2.0, %v680_v15 }
   0xe   :  { %467 = vmatpush.msra.mxu2 %v67_v5  ;;  %468 = vmatpush.msra.mxu3 %v67_v5  ;;  %v57_v21 = vld [vmem:[#allocation2 + $0x20] sm:$0xff]  ;;  %v698_v22 = vld [vmem:[%s872_s2 + $0x58] sm:$0xff]  ;;  %v703_v23 = vld [vmem:[%s872_s2 + $0x50] sm:$0xff]  ;;  %v279_v42 = vmul.f32 %v263_v37, %v672_v10  ;;  %v285_v62 = vmul.f32 %v269_v55, %v685_v16 }
   0xf   :  { %71 = vmatpush.msra.mxu0 %v66_v6  ;;  %469 = vmatpush.msra.mxu1 %v66_v6  ;;  %v708_v24 = vld [vmem:[%s872_s2 + $0x48] sm:$0xff]  ;;  %v56_v25 = vld [vmem:[#allocation2 + $0x18] sm:$0xff]  ;;  %v55_v26 = vld [vmem:[#allocation2 + $0x10] sm:$0xff]  ;;  %v284_v63 = vmul.f32 %v268_v56, %v690_v17  ;;  %v272_v1 = vmul.f32 2.0, %v703_v23 }
  0x10   :  { %470 = vmatpush.msra.mxu2 %v66_v6  ;;  %471 = vmatpush.msra.mxu3 %v66_v6  ;;  %v54_v27 = vld [vmem:[#allocation2 + $0x8] sm:$0xff]  ;;  %v53_v28 = vld [vmem:[#allocation2] sm:$0xff]  ;;  %v728_v33 = vld [vmem:[%s872_s2 + $0x70] sm:$0xff]  ;;  %v271_v2 = vmul.f32 2.0, %v708_v24  ;;  %v286_v6 = vmul.f32 %v270_v3, %v680_v15 }
  0x11   :  { %72 = vmatpush.msra.mxu0 %v65_v7  ;;  %472 = vmatpush.msra.mxu1 %v65_v7  ;;  %v37_v29 = vld [vmem:[%s870_s0] sm:$0xff]  ;;  %v733_v34 = vld [vmem:[%s872_s2 + $0x68] sm:$0xff]  ;;  %v149_v44 = vld [vmem:[%s872_s2 + $0x78] sm:$0xff]  ;;  %v288_v4 = vmul.f32 %v272_v1, %v703_v23 }
  0x12   :  { %473 = vmatpush.msra.mxu2 %v65_v7  ;;  %474 = vmatpush.msra.mxu3 %v65_v7  ;;  %v41_v30 = vld [vmem:[%s870_s0 + $0x20] sm:$0xff]  ;;  %v38_v38 = vld [vmem:[%s870_s0 + $0x8] sm:$0xff]  ;;  %v39_v48 = vld [vmem:[%s870_s0 + $0x10] sm:$0xff]  ;;  %v287_v5 = vmul.f32 %v271_v2, %v708_v24  ;;  %v275_v7 = vmul.f32 2.0, %v733_v34 }
  0x13   :  { %177 = vperm.xlu2 %519, %v662_v8   ;;  %167 = vperm.xlu1 %518, %v667_v9   ;;  %v45_v31 = vld [vmem:[%s870_s0 + $0x40] sm:$0xff]  ;;  %v42_v39 = vld [vmem:[%s870_s0 + $0x28] sm:$0xff]  ;;  %v43_v49 = vld [vmem:[%s870_s0 + $0x30] sm:$0xff]  ;;  %v273_v9 = vmul.f32 2.0, %v698_v22 }
  0x14   :  { %157 = vperm.xlu0 %517, %v672_v10   ;;  %73 = vmatpush.msra.mxu0 %v64_v11  ;;  %v49_v32 = vld [vmem:[%s870_s0 + $0x60] sm:$0xff]  ;;  %v46_v40 = vld [vmem:[%s870_s0 + $0x48] sm:$0xff]  ;;  %v47_v50 = vld [vmem:[%s870_s0 + $0x50] sm:$0xff]  ;;  %v291_v10 = vmul.f32 %v275_v7, %v733_v34 }
  0x15   :  { %475 = vmatpush.msra.mxu1 %v64_v11  ;;  %476 = vmatpush.msra.mxu2 %v64_v11  ;;  %v738_v35 = vld [vmem:[%s872_s2 + $0x60] sm:$0xff]  ;;  %v50_v41 = vld [vmem:[%s870_s0 + $0x68] sm:$0xff]  ;;  %v51_v51 = vld [vmem:[%s870_s0 + $0x70] sm:$0xff] }
  0x16   :  { %477 = vmatpush.msra.mxu3 %v64_v11  ;;  %74 = vmatpush.msra.mxu0 %v63_v12  ;;  %v40_v58 = vld [vmem:[%s870_s0 + $0x18] sm:$0xff]  ;;  %v274_v8 = vmul.f32 2.0, %v738_v35  ;;  %v827_v36 = vld [vmem:[%s873_s3] ss:$0 sm:$0xff]  ;;  %s603_s3 = smov [#allocation5]  }
  0x17   :  { %478 = vmatpush.msra.mxu1 %v63_v12  ;;  %479 = vmatpush.msra.mxu2 %v63_v12  ;;  %v44_v59 = vld [vmem:[%s870_s0 + $0x38] sm:$0xff]  ;;  %s430_s15 = sshll.u32 %s603_s3, 4  ;;  %s431_s15 = int_to_ptr.vmem [resolvable:$true] %s430_s15 }
  0x18   :  { %480 = vmatpush.msra.mxu3 %v63_v12  ;;  %75 = vmatpush.msra.mxu0 %v62_v13  ;;  %v48_v60 = vld [vmem:[%s870_s0 + $0x58] sm:$0xff]  ;;  %v290_v11 = vmul.f32 %v274_v8, %v738_v35  ;;  %v289_v12 = vmul.f32 %v273_v9, %v698_v22 }
  0x19   :  { %481 = vmatpush.msra.mxu1 %v62_v13  ;;  %482 = vmatpush.msra.mxu2 %v62_v13  ;;  %v52_v61 = vld [vmem:[%s870_s0 + $0x78] sm:$0xff] }
  0x1a   :  { %483 = vmatpush.msra.mxu3 %v62_v13  ;;  %76 = vmatpush.msra.mxu0 %v61_v14  ;;  %v277_v13 = vmul.f32 2.0, %v149_v44 }
  0x1b   :  { %484 = vmatpush.msra.mxu1 %v61_v14  ;;  %485 = vmatpush.msra.mxu2 %v61_v14 }
  0x1c   :  { %486 = vmatpush.msra.mxu3 %v61_v14  ;;  %192 = vperm.xlu2 %519, %v680_v15   ;;  %v276_v14 = vmul.f32 2.0, %v728_v33  ;;  %v293_v15 = vmul.f32 %v277_v13, %v149_v44 }
  0x1d   :  { %187 = vperm.xlu1 %518, %v685_v16   ;;  %182 = vperm.xlu0 %517, %v690_v17  }
  0x1e   :  { %77 = vmatpush.msra.mxu0 %v60_v18  ;;  %487 = vmatpush.msra.mxu1 %v60_v18  ;;  %v292_v16 = vmul.f32 %v276_v14, %v728_v33 }
  0x1f   :  { %488 = vmatpush.msra.mxu2 %v60_v18  ;;  %489 = vmatpush.msra.mxu3 %v60_v18 }
  0x20   :  { %78 = vmatpush.msra.mxu0 %v59_v19  ;;  %490 = vmatpush.msra.mxu1 %v59_v19 }
  0x21   :  { %491 = vmatpush.msra.mxu2 %v59_v19  ;;  %492 = vmatpush.msra.mxu3 %v59_v19 }
  0x22   :  { %79 = vmatpush.msra.mxu0 %v58_v20  ;;  %493 = vmatpush.msra.mxu1 %v58_v20 }
  0x23   :  { %494 = vmatpush.msra.mxu2 %v58_v20  ;;  %495 = vmatpush.msra.mxu3 %v58_v20 }
  0x24   :  { %80 = vmatpush.msra.mxu0 %v57_v21  ;;  %496 = vmatpush.msra.mxu1 %v57_v21 }
  0x25   :  { %497 = vmatpush.msra.mxu2 %v57_v21  ;;  %498 = vmatpush.msra.mxu3 %v57_v21 }
  0x26   :  { %207 = vperm.xlu2 %519, %v698_v22   ;;  %202 = vperm.xlu1 %518, %v703_v23  }
  0x27   :  { %197 = vperm.xlu0 %517, %v708_v24   ;;  %81 = vmatpush.msra.mxu0 %v56_v25 }
  0x28   :  { %499 = vmatpush.msra.mxu1 %v56_v25  ;;  %500 = vmatpush.msra.mxu2 %v56_v25 }
  0x29   :  { %501 = vmatpush.msra.mxu3 %v56_v25  ;;  %82 = vmatpush.msra.mxu0 %v55_v26 }
  0x2a   :  { %502 = vmatpush.msra.mxu1 %v55_v26  ;;  %503 = vmatpush.msra.mxu2 %v55_v26 }
  0x2b   :  { %504 = vmatpush.msra.mxu3 %v55_v26  ;;  %83 = vmatpush.msra.mxu0 %v54_v27 }
  0x2c   :  { %505 = vmatpush.msra.mxu1 %v54_v27  ;;  %506 = vmatpush.msra.mxu2 %v54_v27 }
  0x2d   :  { %507 = vmatpush.msra.mxu3 %v54_v27  ;;  %84 = vmatpush.msra.mxu0 %v53_v28 }
  0x2e   :  { %508 = vmatpush.msra.mxu1 %v53_v28  ;;  %509 = vmatpush.msra.mxu2 %v53_v28 }
  0x2f   :  { %510 = vmatpush.msra.mxu3 %v53_v28  ;;  %85 = vmatmul.f32.vlgmr.msra.gmra.mxu0 %v37_v29 }
  0x30   :  { %97 = vmatmul.f32.vlgmr.msra.gmra.mxu1 %v41_v30  ;;  %109 = vmatmul.f32.vlgmr.msra.gmra.mxu2 %v45_v31 }
  0x31   :  { %121 = vmatmul.f32.vlgmr.msra.gmra.mxu3 %v49_v32  ;;  %222 = vperm.xlu2 %519, %v728_v33  }
  0x32   :  { %217 = vperm.xlu1 %518, %v733_v34   ;;  %212 = vperm.xlu0 %517, %v738_v35  }
  0x37   :  { %88 = vmatmul.f32.gmra.mxu0 %v38_v38 }
  0x38   :  { %100 = vmatmul.f32.gmra.mxu1 %v42_v39  ;;  %112 = vmatmul.f32.gmra.mxu2 %v46_v40 }
  0x39   :  { %124 = vmatmul.f32.gmra.mxu3 %v50_v41  ;;  %301 = vperm.xlu2 %519, %v279_v42  }
  0x3a   :  { %296 = vperm.xlu1 %518, %v278_v43   ;;  %227 = vperm.xlu0 %517, %v149_v44  }
  0x3f   :  { %91 = vmatmul.f32.gmra.mxu0 %v39_v48 }
  0x40   :  { %103 = vmatmul.f32.gmra.mxu1 %v43_v49  ;;  %115 = vmatmul.f32.gmra.mxu2 %v47_v50 }
  0x41   :  { %127 = vmatmul.f32.gmra.mxu3 %v51_v51  ;;  %316 = vperm.xlu2 %519, %v282_v52  }
  0x42   :  { %311 = vperm.xlu1 %518, %v281_v53   ;;  %306 = vperm.xlu0 %517, %v280_v54  }
  0x47   :  { %94 = vmatmul.f32.gmra.mxu0 %v40_v58 }
  0x48   :  { %106 = vmatmul.f32.gmra.mxu1 %v44_v59  ;;  %118 = vmatmul.f32.gmra.mxu2 %v48_v60 }
  0x49   :  { %130 = vmatmul.f32.gmra.mxu3 %v52_v61  ;;  %331 = vperm.xlu2 %519, %v285_v62  }
  0x4a   :  { %326 = vperm.xlu1 %518, %v284_v63   ;;  %321 = vperm.xlu0 %517, %v283_v0  }
  0x51   :  { %346 = vperm.xlu2 %519, %v288_v4  }
  0x52   :  { %341 = vperm.xlu1 %518, %v287_v5   ;;  %336 = vperm.xlu0 %517, %v286_v6  }
  0x59   :  { %361 = vperm.xlu2 %519, %v291_v10  }
  0x5a   :  { %356 = vperm.xlu1 %518, %v290_v11   ;;  %351 = vperm.xlu0 %517, %v289_v12  }
  0x62   :  { %371 = vperm.xlu1 %518, %v293_v15   ;;  %366 = vperm.xlu0 %517, %v292_v16  }
  0x63   :  { %v173_v17 = vpop.permute.xlu2 %172 }
  0x6d   :  { %v178_v18 = vpop.permute.xlu2 %177 }
  0x76   :  { %v193_v19 = vpop.permute.xlu2 %192 }
  0x7c   :  { %v163_v20 = vpop.permute.xlu1 %162  ;;  %v153_v21 = vpop.permute.xlu0 %152 }
  0x80   :  { %v812_v23 = vpop.permute.xlu2 %207 }
  0x85   :  { %v814_v24 = vpop.permute.xlu1 %167 }
  0x86   :  { %v158_v22 = vpop.permute.xlu0 %157 }
  0x8b   :  { %v816_v25 = vpop.permute.xlu2 %222 }
  0x8f   :  { %v818_v26 = vpop.permute.xlu1 %187  ;;  %v183_v27 = vpop.permute.xlu0 %182 }
  0x93   :  { %v302_v28 = vpop.permute.xlu2 %301 }
  0x98   :  { %v820_v29 = vpop.permute.xlu1 %202 }
  0x99   :  { %v198_v30 = vpop.permute.xlu0 %197 }
  0x9b   :  { %v317_v31 = vpop.permute.xlu2 %316 }
  0xa3   :  { %v822_v34 = vpop.permute.xlu2 %331 }
  0xa4   :  { %v218_v32 = vpop.permute.xlu1 %217  ;;  %v213_v33 = vpop.permute.xlu0 %212 }
  0xab   :  { %v347_v46 = vpop.permute.xlu2 %346 }
  0xac   :  { %v297_v35 = vpop.permute.xlu1 %296  ;;  %v829_v37 = vpop.permute.xlu0 %227 }
  0xad   :  { %v86_v38 = vpop.f32.mrf.mxu0  ;;  %v98_v41 = vpop.f32.mrf.mxu1 }
  0xae   :  { %v230_v39 = vmul.f32 %v153_v21, %v86_v38  ;;  %v374_v40 = vmul.f32 %v297_v35, %v86_v38  ;;  %v234_v42 = vmul.f32 %v173_v17, %v98_v41  ;;  %v378_v43 = vmul.f32 %v317_v31, %v98_v41 }
  0xb0   :  { %246 = vst [vmem:[#allocation5] sm:$0xff] %v230_v39  ;;  %v394_v44 = vadd.f32 %v827_v36, %v374_v40  ;;  %v398_v45 = vadd.f32 %v827_v36, %v378_v43 }
  0xb1   :  { %250 = vst [vmem:[#allocation5 + $0x20] sm:$0xff] %v234_v42 }
  0xb2   :  { %410 = vst [vmem:[#allocation6] sm:$0xff] %v394_v44 }
  0xb3   :  { %414 = vst [vmem:[#allocation6 + $0x20] sm:$0xff] %v398_v45  ;;  %v110_v49 = vpop.f32.mrf.mxu2  ;;  %v362_v59 = vpop.permute.xlu2 %361 }
  0xb4   :  { %v312_v47 = vpop.permute.xlu1 %311  ;;  %v307_v48 = vpop.permute.xlu0 %306  ;;  %v238_v50 = vmul.f32 %v193_v19, %v110_v49 }
  0xb5   :  { %v833_v51 = vpop.f32.mrf.mxu3  ;;  %v89_v52 = vpop.f32.mrf.mxu0 }
  0xb6   :  { %v242_v53 = vmul.f32 %v213_v33, %v833_v51  ;;  %v231_v54 = vmul.f32 %v158_v22, %v89_v52  ;;  %v375_v55 = vmul.f32 %v302_v28, %v89_v52  ;;  %v101_v56 = vpop.f32.mrf.mxu1  ;;  %254 = vst [vmem:[#allocation5 + $0x40] sm:$0xff] %v238_v50 }
  0xb7   :  { %v235_v57 = vmul.f32 %v178_v18, %v101_v56 }
  0xb8   :  { %258 = vst [vmem:[#allocation5 + $0x60] sm:$0xff] %v242_v53  ;;  %v395_v58 = vadd.f32 %v827_v36, %v375_v55 }
  0xb9   :  { %247 = vst [vmem:[#allocation5 + $0x8] sm:$0xff] %v231_v54 }
  0xba   :  { %411 = vst [vmem:[#allocation6 + $0x8] sm:$0xff] %v395_v58 }
  0xbb   :  { %251 = vst [vmem:[#allocation5 + $0x28] sm:$0xff] %v235_v57  ;;  %v113_v62 = vpop.f32.mrf.mxu2 }
  0xbc   :  { %v327_v60 = vpop.permute.xlu1 %326  ;;  %v322_v61 = vpop.permute.xlu0 %321  ;;  %v239_v0 = vmul.f32 %v198_v30, %v113_v62 }
  0xbd   :  { %v379_v63 = vmul.f32 %v322_v61, %v101_v56  ;;  %v125_v1 = vpop.f32.mrf.mxu3  ;;  %v92_v2 = vpop.f32.mrf.mxu0 }
  0xbe   :  { %v243_v3 = vmul.f32 %v218_v32, %v125_v1  ;;  %v387_v4 = vmul.f32 %v362_v59, %v125_v1  ;;  %v376_v5 = vmul.f32 %v307_v48, %v92_v2  ;;  %v104_v6 = vpop.f32.mrf.mxu1  ;;  %255 = vst [vmem:[#allocation5 + $0x48] sm:$0xff] %v239_v0  ;;  %v232_v8 = vmul.f32 %v163_v20, %v92_v2 }
  0xbf   :  { %v399_v7 = vadd.f32 %v827_v36, %v379_v63  ;;  %v380_v9 = vmul.f32 %v327_v60, %v104_v6  ;;  %v236_v12 = vmul.f32 %v183_v27, %v104_v6 }
  0xc0   :  { %259 = vst [vmem:[#allocation5 + $0x68] sm:$0xff] %v243_v3  ;;  %v407_v10 = vadd.f32 %v827_v36, %v387_v4  ;;  %v396_v11 = vadd.f32 %v827_v36, %v376_v5 }
  0xc1   :  { %415 = vst [vmem:[#allocation6 + $0x28] sm:$0xff] %v399_v7  ;;  %v400_v13 = vadd.f32 %v827_v36, %v380_v9 }
  0xc2   :  { %423 = vst [vmem:[#allocation6 + $0x68] sm:$0xff] %v407_v10 }
  0xc3   :  { %248 = vst [vmem:[#allocation5 + $0x10] sm:$0xff] %v232_v8  ;;  %v116_v17 = vpop.f32.mrf.mxu2 }
  0xc4   :  { %v342_v14 = vpop.permute.xlu1 %341  ;;  %412 = vst [vmem:[#allocation6 + $0x10] sm:$0xff] %v396_v11  ;;  %v337_v15 = vpop.permute.xlu0 %336  ;;  %v240_v19 = vmul.f32 %v820_v29, %v116_v17  ;;  %v384_v20 = vmul.f32 %v347_v46, %v116_v17 }
  0xc5   :  { %v383_v16 = vmul.f32 %v342_v14, %v113_v62  ;;  %252 = vst [vmem:[#allocation5 + $0x30] sm:$0xff] %v236_v12  ;;  %v382_v18 = vmul.f32 %v337_v15, %v110_v49  ;;  %v128_v21 = vpop.f32.mrf.mxu3  ;;  %v95_v22 = vpop.f32.mrf.mxu0 }
  0xc6   :  { %416 = vst [vmem:[#allocation6 + $0x30] sm:$0xff] %v400_v13  ;;  %v377_v27 = vmul.f32 %v312_v47, %v95_v22  ;;  %v107_v30 = vpop.f32.mrf.mxu1  ;;  %v404_v32 = vadd.f32 %v827_v36, %v384_v20  ;;  %v244_v33 = vmul.f32 %v816_v25, %v128_v21  ;;  %v233_v29 = vmul.f32 %v814_v24, %v95_v22 }
  0xc7   :  { %v403_v28 = vadd.f32 %v827_v36, %v383_v16  ;;  %v402_v31 = vadd.f32 %v827_v36, %v382_v18  ;;  %256 = vst [vmem:[#allocation5 + $0x50] sm:$0xff] %v240_v19  ;;  %v381_v35 = vmul.f32 %v822_v34, %v107_v30  ;;  %v237_v39 = vmul.f32 %v818_v26, %v107_v30 }
  0xc8   :  { %v397_v38 = vadd.f32 %v827_v36, %v377_v27  ;;  %420 = vst [vmem:[#allocation6 + $0x50] sm:$0xff] %v404_v32 }
  0xc9   :  { %419 = vst [vmem:[#allocation6 + $0x48] sm:$0xff] %v403_v28  ;;  %v401_v40 = vadd.f32 %v827_v36, %v381_v35 }
  0xca   :  { %418 = vst [vmem:[#allocation6 + $0x40] sm:$0xff] %v402_v31 }
  0xcb   :  { %260 = vst [vmem:[#allocation5 + $0x70] sm:$0xff] %v244_v33  ;;  %v119_v25 = vpop.f32.mrf.mxu2 }
  0xcc   :  { %v357_v41 = vpop.permute.xlu1 %356  ;;  %249 = vst [vmem:[#allocation5 + $0x18] sm:$0xff] %v233_v29  ;;  %v352_v42 = vpop.permute.xlu0 %351  ;;  %v241_v34 = vmul.f32 %v812_v23, %v119_v25 }
  0xcd   :  { %v386_v43 = vmul.f32 %v357_v41, %v833_v51  ;;  %413 = vst [vmem:[#allocation6 + $0x18] sm:$0xff] %v397_v38  ;;  %v385_v44 = vmul.f32 %v352_v42, %v119_v25  ;;  %v131_v24 = vpop.f32.mrf.mxu3 }
  0xce   :  { %253 = vst [vmem:[#allocation5 + $0x38] sm:$0xff] %v237_v39  ;;  %v245_v46 = vmul.f32 %v829_v37, %v131_v24 }
  0xcf   :  { %v406_v45 = vadd.f32 %v827_v36, %v386_v43  ;;  %417 = vst [vmem:[#allocation6 + $0x38] sm:$0xff] %v401_v40  ;;  %v405_v26 = vadd.f32 %v827_v36, %v385_v44 }
  0xd0   :  { %257 = vst [vmem:[#allocation5 + $0x58] sm:$0xff] %v241_v34 }
  0xd1   :  { %422 = vst [vmem:[#allocation6 + $0x60] sm:$0xff] %v406_v45 }
  0xd2   :  { %421 = vst [vmem:[#allocation6 + $0x58] sm:$0xff] %v405_v26 }
  0xd3   :  { %261 = vst [vmem:[#allocation5 + $0x78] sm:$0xff] %v245_v46 }
  0xd4   :  { %v372_v23 = vpop.permute.xlu1 %371  ;;  %v367_v47 = vpop.permute.xlu0 %366  ;;  %438 = dma.vmem_to_hbm [thread:$0]  %s431_s15, 2048, %s433_s18, [#allocation4], %s600_s23, %s600_s23, %s601_s24  }
  0xd5   :  { %v389_v48 = vmul.f32 %v372_v23, %v131_v24  ;;  %v388_v37 = vmul.f32 %v367_v47, %v128_v21 }
  0xd7   :  { %v409_v49 = vadd.f32 %v827_v36, %v389_v48  ;;  %v408_v50 = vadd.f32 %v827_v36, %v388_v37 }
  0xd9   :  { %425 = vst [vmem:[#allocation6 + $0x78] sm:$0xff] %v409_v49 }
  0xda   :  { %424 = vst [vmem:[#allocation6 + $0x70] sm:$0xff] %v408_v50 }
  0xdb   :  { %451 = dma.vmem_to_hbm [thread:$0]  %s444_s20, 2048, %s446_s25, [#allocation7], %s600_s23, %s600_s23, %s601_s24  }
  0xdc   :  { %595 = dma.done.wait [#allocation4], 2048  }
  0xdd   :  { %596 = vsyncadd [#allocation4], 4294965248 }
  0xde   :  { %597 = dma.done.wait [#allocation7], 2048  }
  0xdf   :  { %598 = vsyncadd [#allocation7], 4294965248 }
  0xe0   :  { %460 = vsyncpa [#allocation3], 1 }
  0xe1   :  { %461 = vsyncpa [#allocation4], 1 }
  0xe2   :  { %462 = vsyncpa [#allocation7], 1 }

</bundles_post_ra>
